<compile_context>
chip_gen: v7x
topology: tpu7x:2x2x1
jax: 0.10.0
libtpu: 0.0.40
codegen_flags: <defaults>
</compile_context>

<pallas_src>
import jax
import jax.numpy as jnp
from jax.experimental import pallas as pl
from jax.experimental.pallas import tpu as pltpu

BN_EPS = 1e-5


def _choose_spatial_block(hw, bn, c, target_buffer_bytes=8 * 1024 * 1024):
    """Spatial tile: full extent if <=128, else the largest multiple of 128
    (capped at HW rounded up to 128) whose per-buffer f32 x block fits budget."""
    if hw <= 128:
        return hw
    hw_pad = -(-hw // 128) * 128
    by_budget = (target_buffer_bytes // (bn * c * 4)) // 128 * 128
    return int(max(128, min(hw_pad, by_budget)))


def _choose_batch_block(n, c, hw, acc_budget_bytes=8 * 1024 * 1024):
    """Batch tile: >=2 blocks when N>=16 (v7x megacore), cap 128 (MXU rows),
    and keep the (bn, C, 128) running-max accumulator within budget."""
    if n <= 8:
        return n
    if n < 16:
        return 8
    bn = min(128, -(-((n + 1) // 2) // 8) * 8)          # ~ceil(N/2), multiple of 8
    if hw > 128:                                         # chunked accumulator in use
        cap = max(8, (acc_budget_bytes // (c * 128 * 4)) // 8 * 8)
        bn = min(bn, cap)
    return int(bn)


def fuse_attribute_params(params, attributes):
    """One-time fusion: concat per-attribute Linears, pad to 128 lanes,
    fold eval-mode BN into a single packed (2, C) scale/shift side input."""
    keys = list(attributes.keys())
    w_cat = jnp.concatenate([params["w_" + k] for k in keys], axis=1)        # (C, total)
    b_cat = jnp.concatenate([params["b_" + k] for k in keys], axis=0)[None]  # (1, total)
    total = w_cat.shape[1]
    total_pad = ((total + 127) // 128) * 128
    if total_pad != total:
        w_cat = jnp.pad(w_cat, ((0, 0), (0, total_pad - total)))
        b_cat = jnp.pad(b_cat, ((0, 0), (0, total_pad - total)))
    # BN (eval mode) folded: y = pooled * scale + shift
    scale = params["bn_gamma"] * jax.lax.rsqrt(params["bn_var"] + BN_EPS)    # (1, C)
    shift = params["bn_beta"] - params["bn_mean"] * scale                    # (1, C)
    bn_ss = jnp.concatenate([scale, shift], axis=0)                          # (2, C)
    return {"bn_ss": bn_ss, "w": w_cat, "b": b_cat, "total": total}


def attribute_branch_forward(x_nchw, fused, attributes, *, block_n=None, block_hw=None):
    """x_nchw: (N, C, H, W) float32. Returns dict {'out_'+key: (N, dim)}."""
    N, C, H, W = x_nchw.shape
    HW = H * W
    x = x_nchw.reshape(N, C, HW)        # free reshape: no transpose, no extra HBM pass

    bn = min(N, block_n) if block_n is not None else _choose_batch_block(N, C, HW)
    b_hw = block_hw if block_hw is not None else _choose_spatial_block(HW, bn, C)
    if b_hw % 128 != 0 and b_hw != HW:
        raise ValueError("spatial block must be a multiple of 128 or the full extent")

    chunked = (b_hw % 128 == 0)                 # lane-chunked VPU running max
    num_hw = pl.cdiv(HW, b_hw)
    mask_needed = chunked and (num_hw * b_hw != HW)   # last spatial block reads OOB

    bn_ss, w_cat, b_cat = fused["bn_ss"], fused["w"], fused["b"]
    total_pad = fused["w"].shape[1]

    def kernel(x_ref, ss_ref, w_ref, b_ref, out_ref, acc_ref):
        hw_i = pl.program_id(1)

        def finalize(pooled):
            # folded BatchNorm1d (eval) + ReLU
            y = jnp.maximum(pooled * ss_ref[0:1, :] + ss_ref[1:2, :], 0.0)
            # fused per-attribute Linear layers (lane-dense padded output)
            out_ref[...] = (
                jnp.dot(y, w_ref[...], preferred_element_type=jnp.float32) + b_ref[...]
            )

        if not chunked:
            # Single spatial block (HW <= 128 or full-extent override): no OOB,
            # pool + BN + ReLU + matmul in one invocation.
            finalize(jnp.max(x_ref[...], axis=-1))
            return

        @pl.when(hw_i == 0)
        def _init():
            acc_ref[...] = jnp.full(acc_ref.shape, -jnp.inf, acc_ref.dtype)

        def accumulate(masked):
            xb = x_ref[...]                                          # (bn, C, b_hw)
            if masked:
                col = jax.lax.broadcasted_iota(jnp.int32, xb.shape, 2) + hw_i * b_hw
                xb = jnp.where(col < HW, xb, -jnp.inf)
            # Pure-VPU path: fold the b_hw//128 lane chunks onto 128 lanes and
            # max into the lane-dense accumulator (no per-step XLU reduce).
            xc = xb.reshape(xb.shape[0], xb.shape[1], b_hw // 128, 128)
            acc_ref[...] = jnp.maximum(acc_ref[...], jnp.max(xc, axis=2))

        last = num_hw - 1
        if mask_needed:
            # Mask only where it is actually needed: the last spatial block.
            @pl.when(hw_i < last)
            def _body():
                accumulate(False)

            @pl.when(hw_i == last)
            def _body_masked():
                accumulate(True)
        else:
            accumulate(False)

        @pl.when(hw_i == last)
        def _fin():
            # single 128 -> 1 cross-lane reduce, once per batch block
            finalize(jnp.max(acc_ref[...], axis=-1))

    out = pl.pallas_call(
        kernel,
        out_shape=jax.ShapeDtypeStruct((N, total_pad), jnp.float32),
        grid=(pl.cdiv(N, bn), num_hw),
        in_specs=[
            pl.BlockSpec((bn, C, b_hw), lambda i, j: (i, 0, j)),
            pl.BlockSpec((2, C), lambda i, j: (0, 0)),            # packed scale/shift
            pl.BlockSpec((C, total_pad), lambda i, j: (0, 0)),     # fused weights
            pl.BlockSpec((1, total_pad), lambda i, j: (0, 0)),     # fused bias
        ],
        out_specs=pl.BlockSpec((bn, total_pad), lambda i, j: (i, 0)),
        scratch_shapes=[pltpu.VMEM((bn, C, 128), jnp.float32)],
        compiler_params=pltpu.CompilerParams(
            dimension_semantics=("parallel", "arbitrary"),
            vmem_limit_bytes=48 * 1024 * 1024,
        ),
    )(x, bn_ss, w_cat, b_cat)

    endpoints = {}
    off = 0
    for k in attributes:
        d = attributes[k]
        endpoints["out_" + k] = out[:, off:off + d]
        off += d
    return endpoints


def _reference_forward(x_nchw, params, attributes):
    # plain-JAX reference for correctness checking
    pooled = jnp.max(x_nchw, axis=(2, 3))                                    # (N, C)
    y = (pooled - params["bn_mean"]) * jax.lax.rsqrt(params["bn_var"] + BN_EPS)
    y = y * params["bn_gamma"] + params["bn_beta"]
    y = jnp.maximum(y, 0.0)
    return {
        "out_" + k: y @ params["w_" + k] + params["b_" + k]
        for k in attributes
    }


def init_params(key, input_dim, attributes):
    params = {}
    # weights_init_kaiming on BatchNorm1d: weight ~ N(1, 0.02), bias = 0
    k_bn, key = jax.random.split(key)
    params["bn_gamma"] = (1.0 + 0.02 * jax.random.normal(k_bn, (1, input_dim))).astype(jnp.float32)
    params["bn_beta"] = jnp.zeros((1, input_dim), jnp.float32)
    params["bn_mean"] = jnp.zeros((1, input_dim), jnp.float32)
    params["bn_var"] = jnp.ones((1, input_dim), jnp.float32)
    # per-attribute Linear(input_dim, dim): PyTorch default U(-1/sqrt(in), 1/sqrt(in))
    bound = 1.0 / (input_dim ** 0.5)
    for k, dim in attributes.items():
        kw, kb, key = jax.random.split(key, 3)
        params["w_" + k] = jax.random.uniform(
            kw, (input_dim, dim), jnp.float32, -bound, bound)
        params["b_" + k] = jax.random.uniform(
            kb, (dim,), jnp.float32, -bound, bound)
    return params


if __name__ == "__main__":
    attributes = {"gender": 2, "upper_color": 8, "age": 4}
    key = jax.random.PRNGKey(0)

    # Case 1: H*W = 240 (>128, not a multiple of 128): chunked accumulator,
    #         default tiling -> single 256-wide spatial block with OOB masking.
    # Case 2: same input with block_hw=128 forced -> multi-step running max,
    #         mask applied only on the last spatial block.
    # Case 3: H*W = 64 (<=128): single-block direct-pool path.
    cases = [
        dict(shape=(2, 32, 16, 15), kwargs={}),
        dict(shape=(2, 32, 16, 15), kwargs={"block_hw": 128}),
        dict(shape=(4, 16, 8, 8), kwargs={}),
    ]
    for idx, case in enumerate(cases):
        N, C, H, W = case["shape"]
        key, k_x, k_p = jax.random.split(key, 3)
        x = jax.random.normal(k_x, (N, C, H, W), jnp.float32)
        params = init_params(k_p, C, attributes)
        fused = fuse_attribute_params(params, attributes)   # one-time fusion (hoisted)

        endpoints = attribute_branch_forward(x, fused, attributes, **case["kwargs"])
        jax.block_until_ready(endpoints)

        ref = _reference_forward(x, params, attributes)
        for k in endpoints:
            assert endpoints[k].shape == (N, attributes[k[len("out_"):]]), (idx, k)
            assert jnp.allclose(endpoints[k], ref[k], atol=1e-5, rtol=1e-5), (idx, k)

    print("KERNEL_OK")
</pallas_src>

<mosaic_0001>
module attributes {stable_mosaic.version = 11 : i64} {
  func.func @kernel(%arg0: i32, %arg1: i32, %arg2: memref<2x32x256xf32, #tpu.memory_space<vmem>>, %arg3: memref<2x32xf32, #tpu.memory_space<vmem>>, %arg4: memref<32x128xf32, #tpu.memory_space<vmem>>, %arg5: memref<1x128xf32, #tpu.memory_space<vmem>>, %arg6: memref<2x128xf32, #tpu.memory_space<vmem>>, %arg7: memref<2x32x128xf32, #tpu.memory_space<vmem>>) attributes {dimension_semantics = [#tpu.dimension_semantics<parallel>, #tpu.dimension_semantics<arbitrary>], iteration_bounds = array<i64: 1, 1>, scalar_prefetch = 0 : i64, scratch_operands = 1 : i64, tpu.core_type = #tpu.core_type<tc>, window_params = [{transform_indices = @transform_0, window_bounds = array<i64: 2, 32, 256>}, {pipeline_mode = #tpu.pipeline_mode<synchronous>, transform_indices = @transform_1, window_bounds = array<i64: 2, 32>}, {pipeline_mode = #tpu.pipeline_mode<synchronous>, transform_indices = @transform_2, window_bounds = array<i64: 32, 128>}, {pipeline_mode = #tpu.pipeline_mode<synchronous>, transform_indices = @transform_3, window_bounds = array<i64: 1, 128>}, {transform_indices = @transform_4, window_bounds = array<i64: 2, 128>}]} {
    %c0_i32 = arith.constant 0 : i32
    %0 = arith.cmpi eq, %arg1, %c0_i32 : i32
    %1 = arith.extui %0 : i1 to i32
    %c0_i32_0 = arith.constant 0 : i32
    %2 = arith.cmpi ne, %1, %c0_i32_0 : i32
    scf.if %2 {
      %cst = arith.constant 0xFF800000 : f32
      %12 = vector.broadcast %cst : f32 to vector<2x32x128xf32>
      %c0 = arith.constant 0 : index
      %c0_7 = arith.constant 0 : index
      %c0_8 = arith.constant 0 : index
      %13 = vector.load %arg7[%c0, %c0_7, %c0_8] : memref<2x32x128xf32, #tpu.memory_space<vmem>>, vector<2x32x128xf32>
      tpu.vector_store %arg7[%c0, %c0_7, %c0_8], %12 {strides = array<i32>} : memref<2x32x128xf32, #tpu.memory_space<vmem>>, vector<2x32x128xf32>,
    } else {
    }
    %c0_i32_1 = arith.constant 0 : i32
    %3 = arith.cmpi slt, %arg1, %c0_i32_1 : i32
    %4 = arith.extui %3 : i1 to i32
    %c0_i32_2 = arith.constant 0 : i32
    %5 = arith.cmpi ne, %4, %c0_i32_2 : i32
    scf.if %5 {
      %c0 = arith.constant 0 : index
      %c0_7 = arith.constant 0 : index
      %c0_8 = arith.constant 0 : index
      %12 = vector.load %arg2[%c0, %c0_7, %c0_8] : memref<2x32x256xf32, #tpu.memory_space<vmem>>, vector<2x32x256xf32>
      %13 = vector.shape_cast %12 : vector<2x32x256xf32> to vector<2x32x2x128xf32>
      %c0_9 = arith.constant 0 : index
      %c0_10 = arith.constant 0 : index
      %c0_11 = arith.constant 0 : index
      %14 = vector.load %arg7[%c0_9, %c0_10, %c0_11] : memref<2x32x128xf32, #tpu.memory_space<vmem>>, vector<2x32x128xf32>
      %cst = arith.constant dense<0xFF800000> : vector<2x32x128xf32>
      %15 = vector.multi_reduction <maximumf>, %13, %cst [2] : vector<2x32x2x128xf32> to vector<2x32x128xf32>
      %16 = arith.maximumf %14, %15 : vector<2x32x128xf32>
      %c0_12 = arith.constant 0 : index
      %c0_13 = arith.constant 0 : index
      %c0_14 = arith.constant 0 : index
      %17 = vector.load %arg7[%c0_12, %c0_13, %c0_14] : memref<2x32x128xf32, #tpu.memory_space<vmem>>, vector<2x32x128xf32>
      tpu.vector_store %arg7[%c0_12, %c0_13, %c0_14], %16 {strides = array<i32>} : memref<2x32x128xf32, #tpu.memory_space<vmem>>, vector<2x32x128xf32>,
    } else {
    }
    %c0_i32_3 = arith.constant 0 : i32
    %6 = arith.cmpi eq, %arg1, %c0_i32_3 : i32
    %7 = arith.extui %6 : i1 to i32
    %c0_i32_4 = arith.constant 0 : i32
    %8 = arith.cmpi ne, %7, %c0_i32_4 : i32
    scf.if %8 {
      %c0 = arith.constant 0 : index
      %c0_7 = arith.constant 0 : index
      %c0_8 = arith.constant 0 : index
      %12 = vector.load %arg2[%c0, %c0_7, %c0_8] : memref<2x32x256xf32, #tpu.memory_space<vmem>>, vector<2x32x256xf32>
      %13 = tpu.iota {dimensions = array<i32: 2>} : vector<2x32x256xi32>
      %c256_i32 = arith.constant 256 : i32
      %14 = arith.muli %arg1, %c256_i32 : i32
      %15 = vector.broadcast %14 : i32 to vector<2x32x256xi32>
      %16 = arith.addi %13, %15 : vector<2x32x256xi32>
      %c240_i32 = arith.constant 240 : i32
      %17 = vector.broadcast %c240_i32 : i32 to vector<2x32x256xi32>
      %18 = arith.cmpi slt, %16, %17 : vector<2x32x256xi32>
      %cst = arith.constant 0xFF800000 : f32
      %19 = vector.broadcast %cst : f32 to vector<2x32x256xf32>
      %20 = arith.select %18, %12, %19 : vector<2x32x256xi1>, vector<2x32x256xf32>
      %21 = vector.shape_cast %20 : vector<2x32x256xf32> to vector<2x32x2x128xf32>
      %c0_9 = arith.constant 0 : index
      %c0_10 = arith.constant 0 : index
      %c0_11 = arith.constant 0 : index
      %22 = vector.load %arg7[%c0_9, %c0_10, %c0_11] : memref<2x32x128xf32, #tpu.memory_space<vmem>>, vector<2x32x128xf32>
      %cst_12 = arith.constant dense<0xFF800000> : vector<2x32x128xf32>
      %23 = vector.multi_reduction <maximumf>, %21, %cst_12 [2] : vector<2x32x2x128xf32> to vector<2x32x128xf32>
      %24 = arith.maximumf %22, %23 : vector<2x32x128xf32>
      %c0_13 = arith.constant 0 : index
      %c0_14 = arith.constant 0 : index
      %c0_15 = arith.constant 0 : index
      %25 = vector.load %arg7[%c0_13, %c0_14, %c0_15] : memref<2x32x128xf32, #tpu.memory_space<vmem>>, vector<2x32x128xf32>
      tpu.vector_store %arg7[%c0_13, %c0_14, %c0_15], %24 {strides = array<i32>} : memref<2x32x128xf32, #tpu.memory_space<vmem>>, vector<2x32x128xf32>,
    } else {
    }
    %c0_i32_5 = arith.constant 0 : i32
    %9 = arith.cmpi eq, %arg1, %c0_i32_5 : i32
    %10 = arith.extui %9 : i1 to i32
    %c0_i32_6 = arith.constant 0 : i32
    %11 = arith.cmpi ne, %10, %c0_i32_6 : i32
    scf.if %11 {
      %c0 = arith.constant 0 : index
      %c0_7 = arith.constant 0 : index
      %c0_8 = arith.constant 0 : index
      %12 = vector.load %arg7[%c0, %c0_7, %c0_8] : memref<2x32x128xf32, #tpu.memory_space<vmem>>, vector<2x32x128xf32>
      %cst = arith.constant dense<0xFF800000> : vector<2x32xf32>
      %13 = vector.multi_reduction <maximumf>, %12, %cst [2] : vector<2x32x128xf32> to vector<2x32xf32>
      %c0_9 = arith.constant 0 : index
      %c0_10 = arith.constant 0 : index
      %14 = vector.load %arg3[%c0_9, %c0_10] : memref<2x32xf32, #tpu.memory_space<vmem>>, vector<1x32xf32>
      %15 = vector.broadcast %14 : vector<1x32xf32> to vector<2x32xf32>
      %16 = arith.mulf %13, %15 : vector<2x32xf32>
      %c1 = arith.constant 1 : index
      %c0_11 = arith.constant 0 : index
      %17 = vector.load %arg3[%c1, %c0_11] : memref<2x32xf32, #tpu.memory_space<vmem>>, vector<1x32xf32>
      %18 = vector.broadcast %17 : vector<1x32xf32> to vector<2x32xf32>
      %19 = arith.addf %16, %18 : vector<2x32xf32>
      %cst_12 = arith.constant 0.000000e+00 : f32
      %20 = vector.broadcast %cst_12 : f32 to vector<2x32xf32>
      %21 = arith.maximumf %19, %20 : vector<2x32xf32>
      %c0_13 = arith.constant 0 : index
      %c0_14 = arith.constant 0 : index
      %22 = vector.load %arg4[%c0_13, %c0_14] : memref<32x128xf32, #tpu.memory_space<vmem>>, vector<32x128xf32>
      %cst_15 = arith.constant dense<0.000000e+00> : vector<2x128xf32>
      %23 = tpu.matmul %21, %22, %cst_15 {dimension_numbers = #tpu.dot_dimension_numbers<[1], [0], [0], [1], [0, 0, 1, 1], [], []>} : vector<2x32xf32>, vector<32x128xf32>, vector<2x128xf32> -> vector<2x128xf32>
      %c0_16 = arith.constant 0 : index
      %c0_17 = arith.constant 0 : index
      %24 = vector.load %arg5[%c0_16, %c0_17] : memref<1x128xf32, #tpu.memory_space<vmem>>, vector<1x128xf32>
      %25 = vector.broadcast %24 : vector<1x128xf32> to vector<2x128xf32>
      %26 = arith.addf %23, %25 : vector<2x128xf32>
      %c0_18 = arith.constant 0 : index
      %c0_19 = arith.constant 0 : index
      %27 = vector.load %arg6[%c0_18, %c0_19] : memref<2x128xf32, #tpu.memory_space<vmem>>, vector<2x128xf32>
      tpu.vector_store %arg6[%c0_18, %c0_19], %26 {strides = array<i32>} : memref<2x128xf32, #tpu.memory_space<vmem>>, vector<2x128xf32>,
    } else {
    }
    return
  }
  func.func @transform_0(%arg0: i32, %arg1: i32) -> (i32, i32, i32) {
    %c0_i32 = arith.constant 0 : i32
    %c0_i32_0 = arith.constant 0 : i32
    return %arg0, %c0_i32, %arg1 : i32, i32, i32
  }
  func.func @transform_1(%arg0: i32, %arg1: i32) -> (i32, i32) {
    %c0_i32 = arith.constant 0 : i32
    %c0_i32_0 = arith.constant 0 : i32
    %c0_i32_1 = arith.constant 0 : i32
    return %c0_i32, %c0_i32_0 : i32, i32
  }
  func.func @transform_2(%arg0: i32, %arg1: i32) -> (i32, i32) {
    %c0_i32 = arith.constant 0 : i32
    %c0_i32_0 = arith.constant 0 : i32
    %c0_i32_1 = arith.constant 0 : i32
    return %c0_i32, %c0_i32_0 : i32, i32
  }
  func.func @transform_3(%arg0: i32, %arg1: i32) -> (i32, i32) {
    %c0_i32 = arith.constant 0 : i32
    %c0_i32_0 = arith.constant 0 : i32
    %c0_i32_1 = arith.constant 0 : i32
    return %c0_i32, %c0_i32_0 : i32, i32
  }
  func.func @transform_4(%arg0: i32, %arg1: i32) -> (i32, i32) {
    %c0_i32 = arith.constant 0 : i32
    %c0_i32_0 = arith.constant 0 : i32
    return %arg0, %c0_i32 : i32, i32
  }
}

</mosaic_0001>

<bundles_post_ra>
// kernel: tpu_custom_call.1
= control target key start
LH: loop header
LB: loop body
LE: loop exit
PB: predicated region body
PF: predicated region fallthrough
CT: control target
= control target key end

     0   :  { %9 = vsyncpa [#allocation4], 0  ;;  %s3212_s0 = inlined_call_operand.hbm [shape: f32[2,32,240], index: 0, kind: input, shape index: {}]   ;;  %s3213_s1 = inlined_call_operand.vmem [shape: f32[2,32], index: 1, kind: input, shape index: {}]   ;;  %s3214_s2 = inlined_call_operand.hbm [shape: f32[32,128], index: 2, kind: input, shape index: {}]   ;;  %s3215_s3 = inlined_call_operand.vmem [shape: f32[1,128], index: 3, kind: input, shape index: {}]   ;;  %s3216_s4 = inlined_call_operand.hbm [shape: f32[2,128], index: 4, kind: output, shape index: {}]  }
   0x1   :  { %10 = vsyncpa [#allocation7], 0 }
   0x2   :  { %11 = vsyncpa [#allocation5], 0  ;;  %s2783_s15 = smov [#allocation3]   ;;  %s2711_s19 = scalar_lea.hbm %s3212_s0, 2048 }
   0x3   :  { %s17_s16 = sshll.u32 %s2783_s15, 4  ;;  %p2712_p0 = scmp.ne.s32.totalorder %s3212_s0, %s2711_s19  ;;  %s18_s16 = int_to_ptr.vmem [resolvable:$true] %s17_s16 }
   0x4   :  { %p2715_p1 = scmp.lt.u32.totalorder %s2711_s19, %s3212_s0 }
   0x6   :  { %p2717_p2 = pnand %p2715_p1, %p2712_p0 }
   0x8   :  { %2720 = shalt.err (!%p2717_p2)
}
   0x9   :  { %s2721_s24 = scalar_lea.vmem %s18_s16, 2048  ;;  %p2726_p4 = scmp.lt.s32.totalorder %s18_s16, %s18_s16 }
   0xa   :  { %p2722_p3 = scmp.ne.s32.totalorder %s18_s16, %s2721_s24  ;;  %p2727_p5 = scmp.lt.s32.totalorder %s2721_s24, %s2721_s24 }
   0xc   :  { %p2728_p6 = por %p2727_p5, %p2726_p4 }
   0xe   :  { %p2729_p7 = pnand %p2728_p6, %p2722_p3 }
  0x10   :  { %2732 = shalt.err (!%p2729_p7)
}
  0x11   :  { %s2784_s25 = smov 256   ;;  %s2785_s26 = smov 16  }
  0x12   :  { %23 = dma.hbm_to_vmem [thread:$0]  %s3212_s0, 2048, %s18_s16, [#allocation4], %s2784_s25, %s2784_s25, %s2785_s26  }
  0x13   :  { %s2786_s29 = smov [#allocation6]   ;;  %s2733_s7 = scalar_lea.hbm %s3214_s2, 512 }
  0x14   :  { %s31_s30 = sshll.u32 %s2786_s29, 4  ;;  %p2734_p8 = scmp.ne.s32.totalorder %s3214_s2, %s2733_s7  ;;  %s32_s30 = int_to_ptr.vmem [resolvable:$true] %s31_s30 }
  0x15   :  { %p2737_p9 = scmp.lt.u32.totalorder %s2733_s7, %s3214_s2 }
  0x17   :  { %p2739_p10 = pnand %p2737_p9, %p2734_p8 }
  0x19   :  { %2742 = shalt.err (!%p2739_p10)
}
  0x1a   :  { %s2743_s12 = scalar_lea.vmem %s32_s30, 512  ;;  %p2748_p12 = scmp.lt.s32.totalorder %s32_s30, %s32_s30 }
  0x1b   :  { %p2744_p11 = scmp.ne.s32.totalorder %s32_s30, %s2743_s12  ;;  %p2749_p13 = scmp.lt.s32.totalorder %s2743_s12, %s2743_s12 }
  0x1d   :  { %p2750_p0 = por %p2749_p13, %p2748_p12 }
  0x1f   :  { %p2751_p1 = pnand %p2750_p0, %p2744_p11 }
  0x21   :  { %2754 = shalt.err (!%p2751_p1)
}
  0x22   :  { %s2787_s0 = smov 128   ;;  %s2788_s13 = smov 8  }
  0x23   :  { %37 = dma.hbm_to_vmem [thread:$0]  %s3214_s2, 512, %s32_s30, [#allocation7], %s2787_s0, %s2787_s0, %s2788_s13  }
  0x24   :  { %2777 = dma.done.wait [#allocation4], 2048  }
  0x25   :  { %2778 = vsyncadd [#allocation4], 4294965248 }
  0x26   :  { %2779 = dma.done.wait [#allocation7], 512  }
  0x27   :  { %2780 = vsyncadd [#allocation7], 4294966784  ;;  %v1233_v0 = vlaneseq  ;;  %v2789_v1 = vmov 1983009808   ;;  %v2790_v5 = vmov 1934713408  }
  0x28   :  { %v1260_v2 = vunpack.c.l.s4 %v2789_v1  ;;  %v1291_v6 = vunpack.c.l.s4 %v2790_v5  ;;  %v2670_v11 = vld [vmem:[%s3213_s1] ss:$0 sm:$0xff]  ;;  %v1218_v13 = vld [vmem:[#allocation3 + $0x8] sm:$0xff]  ;;  %vm1794_vm1 = vcmask 1041408   ;;  %v2791_v15 = vmov 0.0   ;;  %v1219_v19 = vld [vmem:[#allocation3 + $0x10] sm:$0xff] }
  0x29   :  { %v2845_v3 = vand.u32 127, %v1233_v0  ;;  %v2847_v4 = vshrl.u32 %v1233_v0, 7  ;;  %v1217_v12 = vld [vmem:[#allocation3] sm:$0xff]  ;;  %2429 = vbcast.lane.b32.xlu1 %v2670_v11, 264  ;;  %2425 = vbcast.lane.b32.xlu0 %v2670_v11, 256  ;;  %v1220_v20 = vld [vmem:[#allocation3 + $0x18] sm:$0xff]  ;;  %v1324_v24 = vcombine.high %v1219_v19, %v2791_v15 }
  0x2a   :  { %v1261_v7 = vunpack.c.0.s8 %v1260_v2  ;;  %v1292_v9 = vunpack.c.0.s8 %v1291_v6  ;;  %v1258_v16 = vcombine.high %v1217_v12, %v2791_v15  ;;  %v1222_v25 = vld [vmem:[#allocation3 + $0x28] sm:$0xff]  ;;  %vm2307_vm2 = vcmask 1041409   ;;  %s2795_s20 = smov [#allocation8]  }
  0x2b   :  { %v2850_v8 = vadd.s32 128, %v2845_v3  ;;  %vm2309_vm3 = vcmask 1042434   ;;  %vm2311_vm4 = vcmask 1043459   ;;  %vm2313_vm5 = vcmask 1044484   ;;  %s2660_s21 = sshll.u32 %s2795_s20, 4  ;;  %s2661_s21 = int_to_ptr.vmem [resolvable:$true] %s2660_s21 }
  0x2c   :  { %v2853_v10 = vsub.s32 %v1261_v7, %v2847_v4  ;;  %v2864_v18 = vsub.s32 %v1292_v9, %v2847_v4  ;;  %vm2315_vm6 = vcmask 1045509   ;;  %vm2317_vm7 = vcmask 1046534   ;;  %s2755_s22 = scalar_lea.vmem %s2661_s21, 32  ;;  %p2760_p3 = scmp.lt.s32.totalorder %s2661_s21, %s2661_s21 }
  0x2d   :  { %vm1241_vm0 = vcmp.lt.s32.totalorder %v2850_v8, 240  ;;  %2433 = vbcast.lane.b32.xlu1 %v2670_v11, 272  ;;  %vm2319_vm8 = vcmask 1047559   ;;  %vm2794_vm9 = vmmov 0   ;;  %vm2544_vm10 = vcmask 130112   ;;  %p2756_p2 = scmp.ne.s32.totalorder %s2661_s21, %s2755_s22  ;;  %p2761_p4 = scmp.lt.s32.totalorder %s2755_s22, %s2755_s22 }
  0x2e   :  { %v1243_v14 = vsel %vm1241_vm0, %v1218_v13, -inf  ;;  %v1265_v17 = vrot.slane %v1217_v12, %v2853_v10  ;;  %v1245_v23 = vsel %vm1241_vm0, %v1220_v20, -inf  ;;  %v1272_v26 = vrot.slane %v1258_v16, %v2853_v10  ;;  %2687 = vmatprep.mubr.msk.f32.mxu0 %vm2794_vm9, %v2791_v15 }
  0x2f   :  { %v1273_v21 = vcombine.high %v1243_v14, %v2791_v15  ;;  %v1280_v22 = vrot.slane %v1243_v14, %v2853_v10  ;;  %v1331_v27 = vrot.slane %v1219_v19, %v2853_v10  ;;  %v1339_v28 = vcombine.high %v1245_v23, %v2791_v15  ;;  %p2762_p5 = por %p2761_p4, %p2760_p3 }
  0x30   :  { %v1346_v29 = vrot.slane %v1245_v23, %v2853_v10  ;;  %v1338_v33 = vrot.slane %v1324_v24, %v2853_v10  ;;  %v2880_v37 = vsel %vm1241_vm0, %v1222_v25, -inf  ;;  %vm2551_vm11 = vcmask 195712  }
  0x31   :  { %v1287_v30 = vrot.slane %v1273_v21, %v2853_v10  ;;  %v1288_v31 = vcombine.low %v1265_v17, %v1280_v22  ;;  %v1289_v32 = vcombine.high %v1265_v17, %v1280_v22  ;;  %v1353_v34 = vrot.slane %v1339_v28, %v2853_v10  ;;  %2437 = vbcast.lane.b32.xlu1 %v2670_v11, 280  ;;  %p2763_p6 = pnand %p2762_p5, %p2756_p2 }
  0x32   :  { %v1354_v35 = vcombine.low %v1331_v27, %v1346_v29  ;;  %v1355_v36 = vcombine.high %v1331_v27, %v1346_v29  ;;  %vm2558_vm12 = vcmask 261312   ;;  %vm2580_vm13 = vcmask 261120  }
  0x33   :  { %v1296_v38 = vrot.slane %v1288_v31, %v2864_v18  ;;  %v1303_v39 = vrot.slane %v1289_v32, %v2864_v18  ;;  %v1304_v40 = vcombine.low %v1272_v26, %v1287_v30  ;;  %v1305_v41 = vcombine.high %v1272_v26, %v1287_v30 }
  0x34   :  { %v2885_v42 = vrot.slane %v1354_v35, %v2864_v18  ;;  %v2888_v43 = vrot.slane %v1355_v36, %v2864_v18  ;;  %v1370_v44 = vcombine.low %v1338_v33, %v1353_v34  ;;  %v1371_v45 = vcombine.high %v1338_v33, %v1353_v34 }
  0x35   :  { %v1312_v46 = vrot.slane %v1304_v40, %v2864_v18  ;;  %v1319_v47 = vrot.slane %v1305_v41, %v2864_v18  ;;  %v1320_v48 = vcombine.high %v1296_v38, %v2791_v15  ;;  %v1321_v49 = vcombine.high %v1303_v39, %v2791_v15 }
  0x36   :  { %v1795_v50 = vsel %vm1794_vm1, %v1296_v38, -inf  ;;  %v1809_v51 = vsel %vm1794_vm1, %v1303_v39, -inf  ;;  %v2897_v52 = vrot.slane %v1370_v44, %v2864_v18  ;;  %v2900_v53 = vrot.slane %v1371_v45, %v2864_v18 }
  0x37   :  { %v1322_v54 = vcombine.high %v1312_v46, %v2791_v15  ;;  %v1323_v55 = vcombine.high %v1319_v47, %v2791_v15  ;;  %v1796_v56 = vrot.slane %v1795_v50, 4  ;;  %v1802_v57 = vsel %vm1794_vm1, %v1320_v48, -inf }
  0x38   :  { %v1803_v58 = vrot.slane %v1802_v57, 4  ;;  %v1810_v59 = vrot.slane %v1809_v51, 4  ;;  %v1816_v60 = vsel %vm1794_vm1, %v1321_v49, -inf  ;;  %v1823_v61 = vsel %vm1794_vm1, %v1312_v46, -inf }
  0x39   :  { %v1797_v62 = vmax.f32 %v1795_v50, %v1796_v56  ;;  %v1817_v63 = vrot.slane %v1816_v60, 4  ;;  %v1824_v0 = vrot.slane %v1823_v61, 4  ;;  %v1830_v1 = vsel %vm1794_vm1, %v1322_v54, -inf }
  0x3a   :  { %v1804_v2 = vmax.f32 %v1802_v57, %v1803_v58  ;;  %v1811_v5 = vmax.f32 %v1809_v51, %v1810_v59  ;;  %v1831_v6 = vrot.slane %v1830_v1, 4  ;;  %v1837_v7 = vsel %vm1794_vm1, %v1319_v47, -inf }
  0x3b   :  { %v1798_v9 = vrot.slane %v1797_v62, 2  ;;  %v1818_v11 = vmax.f32 %v1816_v60, %v1817_v63  ;;  %v1825_v12 = vmax.f32 %v1823_v61, %v1824_v0  ;;  %v1838_v13 = vrot.slane %v1837_v7, 4 }
  0x3c   :  { %v1805_v14 = vrot.slane %v1804_v2, 2  ;;  %v1812_v16 = vrot.slane %v1811_v5, 2  ;;  %v1832_v17 = vmax.f32 %v1830_v1, %v1831_v6  ;;  %v1844_v19 = vsel %vm1794_vm1, %v1323_v55, -inf }
  0x3d   :  { %v1799_v20 = vmax.f32 %v1797_v62, %v1798_v9  ;;  %v1819_v21 = vrot.slane %v1818_v11, 2  ;;  %v1826_v22 = vrot.slane %v1825_v12, 2  ;;  %v1839_v23 = vmax.f32 %v1837_v7, %v1838_v13 }
  0x3e   :  { %v1806_v24 = vmax.f32 %v1804_v2, %v1805_v14  ;;  %v1813_v25 = vmax.f32 %v1811_v5, %v1812_v16  ;;  %v1833_v26 = vrot.slane %v1832_v17, 2  ;;  %v1845_v27 = vrot.slane %v1844_v19, 4 }
  0x3f   :  { %v1800_v28 = vrot.slane %v1799_v20, 1  ;;  %v1820_v29 = vmax.f32 %v1818_v11, %v1819_v21  ;;  %v1827_v30 = vmax.f32 %v1825_v12, %v1826_v22  ;;  %v1840_v31 = vrot.slane %v1839_v23, 2 }
  0x40   :  { %v1807_v32 = vrot.slane %v1806_v24, 1  ;;  %v1814_v33 = vrot.slane %v1813_v25, 1  ;;  %v1834_v34 = vmax.f32 %v1832_v17, %v1833_v26  ;;  %v1846_v35 = vmax.f32 %v1844_v19, %v1845_v27 }
  0x41   :  { %v1801_v36 = vmax.f32 %v1799_v20, %v1800_v28  ;;  %v1821_v38 = vrot.slane %v1820_v29, 1  ;;  %v1828_v39 = vrot.slane %v1827_v30, 1  ;;  %v1841_v40 = vmax.f32 %v1839_v23, %v1840_v31 }
  0x42   :  { %v1808_v41 = vmax.f32 %v1806_v24, %v1807_v32  ;;  %v1815_v44 = vmax.f32 %v1813_v25, %v1814_v33  ;;  %v1835_v45 = vrot.slane %v1834_v34, 1  ;;  %v1847_v46 = vrot.slane %v1846_v35, 2 }
  0x43   :  { %v1822_v47 = vmax.f32 %v1820_v29, %v1821_v38  ;;  %v1829_v48 = vmax.f32 %v1827_v30, %v1828_v39  ;;  %v1842_v49 = vrot.slane %v1841_v40, 1  ;;  %v1386_v50 = vcombine.high %v2885_v42, %v2791_v15 }
  0x44   :  { %v1836_v51 = vmax.f32 %v1834_v34, %v1835_v45  ;;  %v1848_v54 = vmax.f32 %v1846_v35, %v1847_v46  ;;  %v2308_v55 = vsel %vm2307_vm2, %v1808_v41, %v1801_v36  ;;  %v1387_v56 = vcombine.high %v2888_v43, %v2791_v15 }
  0x45   :  { %v1843_v57 = vmax.f32 %v1841_v40, %v1842_v49  ;;  %v2310_v58 = vsel %vm2309_vm3, %v1815_v44, %v2308_v55  ;;  %v1388_v59 = vcombine.high %v2897_v52, %v2791_v15  ;;  %v1389_v60 = vcombine.high %v2900_v53, %v2791_v15 }
  0x46   :  { %v1849_v61 = vrot.slane %v1848_v54, 1  ;;  %v2312_v62 = vsel %vm2311_vm4, %v1822_v47, %v2310_v58  ;;  %v1851_v63 = vsel %vm1794_vm1, %v2885_v42, -inf  ;;  %v1858_v0 = vsel %vm1794_vm1, %v1386_v50, -inf }
  0x47   :  { %v2314_v1 = vsel %vm2313_vm5, %v1829_v48, %v2312_v62  ;;  %v1852_v2 = vrot.slane %v1851_v63, 4  ;;  %v1859_v5 = vrot.slane %v1858_v0, 4  ;;  %v1865_v6 = vsel %vm1794_vm1, %v2888_v43, -inf }
  0x48   :  { %v1850_v7 = vmax.f32 %v1848_v54, %v1849_v61  ;;  %v2316_v9 = vsel %vm2315_vm6, %v1836_v51, %v2314_v1  ;;  %v1866_v11 = vrot.slane %v1865_v6, 4  ;;  %v1872_v12 = vsel %vm1794_vm1, %v1387_v56, -inf  ;;  %v1221_v56 = vld [vmem:[#allocation3 + $0x20] sm:$0xff]  ;;  %v1224_v1 = vld [vmem:[#allocation3 + $0x38] sm:$0xff] }
  0x49   :  { %v2318_v13 = vsel %vm2317_vm7, %v1843_v57, %v2316_v9  ;;  %v1853_v14 = vmax.f32 %v1851_v63, %v1852_v2  ;;  %v1860_v16 = vmax.f32 %v1858_v0, %v1859_v5  ;;  %v1873_v42 = vrot.slane %v1872_v12, 4 }
  0x4a   :  { %v2320_v17 = vsel %vm2319_vm8, %v1850_v7, %v2318_v13  ;;  %v1867_v19 = vmax.f32 %v1865_v6, %v1866_v11  ;;  %v1879_v20 = vsel %vm1794_vm1, %v2897_v52, -inf  ;;  %v1886_v21 = vsel %vm1794_vm1, %v1388_v59, -inf }
  0x4b   :  { %v1854_v43 = vrot.slane %v1853_v14, 2  ;;  %v1861_v22 = vrot.slane %v1860_v16, 2  ;;  %v1874_v23 = vmax.f32 %v1872_v12, %v1873_v42  ;;  %v1880_v24 = vrot.slane %v1879_v20, 4  ;;  %2402 = vmax.xlane.f32.xlu0 %v2320_v17 }
  0x4c   :  { %v1868_v25 = vrot.slane %v1867_v19, 2  ;;  %v1887_v26 = vrot.slane %v1886_v21, 4  ;;  %v1893_v27 = vsel %vm1794_vm1, %v2900_v53, -inf  ;;  %v1900_v28 = vsel %vm1794_vm1, %v1389_v60, -inf }
  0x4d   :  { %v1855_v29 = vmax.f32 %v1853_v14, %v1854_v43  ;;  %v1862_v30 = vmax.f32 %v1860_v16, %v1861_v22  ;;  %v1875_v31 = vrot.slane %v1874_v23, 2  ;;  %v1881_v32 = vmax.f32 %v1879_v20, %v1880_v24  ;;  %v1223_v14 = vld [vmem:[#allocation3 + $0x30] sm:$0xff] }
  0x4e   :  { %v1869_v33 = vmax.f32 %v1867_v19, %v1868_v25  ;;  %v1888_v52 = vmax.f32 %v1886_v21, %v1887_v26  ;;  %v1894_v34 = vrot.slane %v1893_v27, 4  ;;  %v1901_v35 = vrot.slane %v1900_v28, 4 }
  0x4f   :  { %v1856_v36 = vrot.slane %v1855_v29, 1  ;;  %v1863_v38 = vrot.slane %v1862_v30, 1  ;;  %v1876_v39 = vmax.f32 %v1874_v23, %v1875_v31  ;;  %v1882_v40 = vrot.slane %v1881_v32, 2 }
  0x50   :  { %v1870_v41 = vrot.slane %v1869_v33, 1  ;;  %v1889_v44 = vrot.slane %v1888_v52, 2  ;;  %v1895_v45 = vmax.f32 %v1893_v27, %v1894_v34  ;;  %v1902_v46 = vmax.f32 %v1900_v28, %v1901_v35 }
  0x51   :  { %v1857_v53 = vmax.f32 %v1855_v29, %v1856_v36  ;;  %v1864_v47 = vmax.f32 %v1862_v30, %v1863_v38  ;;  %v1877_v48 = vrot.slane %v1876_v39, 1  ;;  %v1883_v49 = vmax.f32 %v1881_v32, %v1882_v40 }
  0x52   :  { %v1871_v50 = vmax.f32 %v1869_v33, %v1870_v41  ;;  %v1890_v51 = vmax.f32 %v1888_v52, %v1889_v44  ;;  %v1896_v54 = vrot.slane %v1895_v45, 2  ;;  %v1903_v55 = vrot.slane %v1902_v46, 2 }
  0x53   :  { %v1878_v57 = vmax.f32 %v1876_v39, %v1877_v48  ;;  %v1884_v58 = vrot.slane %v1883_v49, 1  ;;  %v2321_v59 = vsel %vm2307_vm2, %v1864_v47, %v1857_v53  ;;  %v1390_v60 = vcombine.high %v1221_v56, %v2791_v15 }
  0x54   :  { %v1891_v61 = vrot.slane %v1890_v51, 1  ;;  %v1897_v62 = vmax.f32 %v1895_v45, %v1896_v54  ;;  %v1904_v63 = vmax.f32 %v1902_v46, %v1903_v55  ;;  %v2322_v0 = vsel %vm2309_vm3, %v1871_v50, %v2321_v59 }
  0x55   :  { %v1885_v2 = vmax.f32 %v1883_v49, %v1884_v58  ;;  %v2323_v5 = vsel %vm2311_vm4, %v1878_v57, %v2322_v0  ;;  %v1397_v6 = vrot.slane %v1221_v56, %v2853_v10  ;;  %v1404_v7 = vrot.slane %v1390_v60, %v2853_v10 }
  0x56   :  { %v1892_v9 = vmax.f32 %v1890_v51, %v1891_v61  ;;  %v1898_v11 = vrot.slane %v1897_v62, 1  ;;  %v1905_v12 = vrot.slane %v1904_v63, 1  ;;  %v1405_v13 = vcombine.high %v2880_v37, %v2791_v15 }
  0x57   :  { %v2324_v16 = vsel %vm2313_vm5, %v1885_v2, %v2323_v5  ;;  %v1412_v42 = vrot.slane %v2880_v37, %v2853_v10  ;;  %v1249_v17 = vsel %vm1241_vm0, %v1224_v1, -inf  ;;  %v1456_v19 = vcombine.high %v1223_v14, %v2791_v15  ;;  %v1226_v37 = vld [vmem:[#allocation3 + $0x48] sm:$0xff] }
  0x58   :  { %v1899_v20 = vmax.f32 %v1897_v62, %v1898_v11  ;;  %v1906_v21 = vmax.f32 %v1904_v63, %v1905_v12  ;;  %v2325_v43 = vsel %vm2315_vm6, %v1892_v9, %v2324_v16  ;;  %v1419_v22 = vrot.slane %v1405_v13, %v2853_v10 }
  0x59   :  { %v1420_v23 = vcombine.low %v1397_v6, %v1412_v42  ;;  %v1421_v24 = vcombine.high %v1397_v6, %v1412_v42  ;;  %v2954_v25 = vrot.slane %v1223_v14, %v2853_v10  ;;  %v2957_v26 = vrot.slane %v1456_v19, %v2853_v10 }
  0x5a   :  { %v2326_v27 = vsel %vm2317_vm7, %v1899_v20, %v2325_v43  ;;  %v1436_v28 = vcombine.low %v1404_v7, %v1419_v22  ;;  %v1437_v29 = vcombine.high %v1404_v7, %v1419_v22  ;;  %v1471_v30 = vcombine.high %v1249_v17, %v2791_v15 }
  0x5b   :  { %v2327_v31 = vsel %vm2319_vm8, %v1906_v21, %v2326_v27  ;;  %v1428_v32 = vrot.slane %v1420_v23, %v2864_v18  ;;  %v1435_v33 = vrot.slane %v1421_v24, %v2864_v18  ;;  %v2965_v52 = vrot.slane %v1249_v17, %v2853_v10 }
  0x5c   :  { %2404 = vmax.xlane.f32.xlu0 %v2327_v31  ;;  %v1444_v34 = vrot.slane %v1436_v28, %v2864_v18  ;;  %v1451_v35 = vrot.slane %v1437_v29, %v2864_v18  ;;  %v2970_v36 = vrot.slane %v1471_v30, %v2853_v10  ;;  %v2974_v38 = vsel %vm1241_vm0, %v1226_v37, -inf }
  0x5d   :  { %v1452_v39 = vcombine.high %v1428_v32, %v2791_v15  ;;  %v1453_v40 = vcombine.high %v1435_v33, %v2791_v15  ;;  %v1907_v41 = vsel %vm1794_vm1, %v1428_v32, -inf  ;;  %v1921_v44 = vsel %vm1794_vm1, %v1435_v33, -inf }
  0x5e   :  { %v1454_v45 = vcombine.high %v1444_v34, %v2791_v15  ;;  %v1455_v46 = vcombine.high %v1451_v35, %v2791_v15  ;;  %v1908_v53 = vrot.slane %v1907_v41, 4  ;;  %v1922_v47 = vrot.slane %v1921_v44, 4 }
  0x5f   :  { %v1914_v48 = vsel %vm1794_vm1, %v1452_v39, -inf  ;;  %v1928_v49 = vsel %vm1794_vm1, %v1453_v40, -inf  ;;  %v1935_v50 = vsel %vm1794_vm1, %v1444_v34, -inf  ;;  %v1949_v51 = vsel %vm1794_vm1, %v1451_v35, -inf }
  0x60   :  { %v1909_v54 = vmax.f32 %v1907_v41, %v1908_v53  ;;  %v1915_v55 = vrot.slane %v1914_v48, 4  ;;  %v1923_v56 = vmax.f32 %v1921_v44, %v1922_v47  ;;  %v1929_v57 = vrot.slane %v1928_v49, 4 }
  0x61   :  { %v1936_v58 = vrot.slane %v1935_v50, 4  ;;  %v1942_v59 = vsel %vm1794_vm1, %v1454_v45, -inf  ;;  %v1950_v60 = vrot.slane %v1949_v51, 4  ;;  %v1956_v61 = vsel %vm1794_vm1, %v1455_v46, -inf }
  0x62   :  { %v1910_v62 = vrot.slane %v1909_v54, 2  ;;  %v1916_v63 = vmax.f32 %v1914_v48, %v1915_v55  ;;  %v1924_v0 = vrot.slane %v1923_v56, 2  ;;  %v1930_v1 = vmax.f32 %v1928_v49, %v1929_v57 }
  0x63   :  { %v1937_v2 = vmax.f32 %v1935_v50, %v1936_v58  ;;  %v1943_v5 = vrot.slane %v1942_v59, 4  ;;  %v1951_v6 = vmax.f32 %v1949_v51, %v1950_v60  ;;  %v1957_v7 = vrot.slane %v1956_v61, 4 }
  0x64   :  { %v1911_v9 = vmax.f32 %v1909_v54, %v1910_v62  ;;  %v1917_v11 = vrot.slane %v1916_v63, 2  ;;  %v1925_v12 = vmax.f32 %v1923_v56, %v1924_v0  ;;  %v1931_v13 = vrot.slane %v1930_v1, 2 }
  0x65   :  { %v1938_v14 = vrot.slane %v1937_v2, 2  ;;  %v1944_v16 = vmax.f32 %v1942_v59, %v1943_v5  ;;  %v1952_v42 = vrot.slane %v1951_v6, 2  ;;  %v1958_v17 = vmax.f32 %v1956_v61, %v1957_v7 }
  0x66   :  { %v1912_v19 = vrot.slane %v1911_v9, 1  ;;  %v1918_v20 = vmax.f32 %v1916_v63, %v1917_v11  ;;  %v1926_v21 = vrot.slane %v1925_v12, 1  ;;  %v1932_v43 = vmax.f32 %v1930_v1, %v1931_v13 }
  0x67   :  { %v1939_v22 = vmax.f32 %v1937_v2, %v1938_v14  ;;  %v1945_v23 = vrot.slane %v1944_v16, 2  ;;  %v1953_v24 = vmax.f32 %v1951_v6, %v1952_v42  ;;  %v1959_v37 = vrot.slane %v1958_v17, 2 }
  0x68   :  { %v1913_v27 = vmax.f32 %v1911_v9, %v1912_v19  ;;  %v1919_v28 = vrot.slane %v1918_v20, 1  ;;  %v1927_v29 = vmax.f32 %v1925_v12, %v1926_v21  ;;  %v1933_v30 = vrot.slane %v1932_v43, 1 }
  0x69   :  { %v1940_v31 = vrot.slane %v1939_v22, 1  ;;  %v1946_v32 = vmax.f32 %v1944_v16, %v1945_v23  ;;  %v1954_v33 = vrot.slane %v1953_v24, 1  ;;  %v1960_v34 = vmax.f32 %v1958_v17, %v1959_v37 }
  0x6a   :  { %v1920_v35 = vmax.f32 %v1918_v20, %v1919_v28  ;;  %v1934_v39 = vmax.f32 %v1932_v43, %v1933_v30  ;;  %v1486_v40 = vcombine.low %v2954_v25, %v2965_v52  ;;  %v1487_v41 = vcombine.high %v2954_v25, %v2965_v52 }
  0x6b   :  { %v1941_v44 = vmax.f32 %v1939_v22, %v1940_v31  ;;  %v1947_v45 = vrot.slane %v1946_v32, 1  ;;  %v1955_v46 = vmax.f32 %v1953_v24, %v1954_v33  ;;  %v1961_v53 = vrot.slane %v1960_v34, 1 }
  0x6c   :  { %v2328_v47 = vsel %vm2307_vm2, %v1920_v35, %v1913_v27  ;;  %v1494_v48 = vrot.slane %v1486_v40, %v2864_v18  ;;  %v1501_v49 = vrot.slane %v1487_v41, %v2864_v18  ;;  %v1502_v50 = vcombine.low %v2957_v26, %v2970_v36 }
  0x6d   :  { %v1948_v51 = vmax.f32 %v1946_v32, %v1947_v45  ;;  %v1962_v54 = vmax.f32 %v1960_v34, %v1961_v53  ;;  %v2329_v55 = vsel %vm2309_vm3, %v1927_v29, %v2328_v47  ;;  %v1503_v25 = vcombine.high %v2957_v26, %v2970_v36 }
  0x6e   :  { %v2330_v52 = vsel %vm2311_vm4, %v1934_v39, %v2329_v55  ;;  %v1510_v56 = vrot.slane %v1502_v50, %v2864_v18  ;;  %v1518_v57 = vcombine.high %v1494_v48, %v2791_v15  ;;  %v1519_v58 = vcombine.high %v1501_v49, %v2791_v15  ;;  %v1225_v50 = vld [vmem:[#allocation3 + $0x40] sm:$0xff] }
  0x6f   :  { %v2331_v59 = vsel %vm2313_vm5, %v1941_v44, %v2330_v52  ;;  %v1517_v60 = vrot.slane %v1503_v25, %v2864_v18  ;;  %v1963_v61 = vsel %vm1794_vm1, %v1494_v48, -inf  ;;  %v1977_v62 = vsel %vm1794_vm1, %v1501_v49, -inf }
  0x70   :  { %v2332_v63 = vsel %vm2315_vm6, %v1948_v51, %v2331_v59  ;;  %v1520_v26 = vcombine.high %v1510_v56, %v2791_v15  ;;  %v1964_v36 = vrot.slane %v1963_v61, 4  ;;  %v1970_v0 = vsel %vm1794_vm1, %v1518_v57, -inf }
  0x71   :  { %v2333_v1 = vsel %vm2317_vm7, %v1955_v46, %v2332_v63  ;;  %v1521_v2 = vcombine.high %v1517_v60, %v2791_v15  ;;  %v1971_v5 = vrot.slane %v1970_v0, 4  ;;  %v1978_v6 = vrot.slane %v1977_v62, 4 }
  0x72   :  { %v2334_v7 = vsel %vm2319_vm8, %v1962_v54, %v2333_v1  ;;  %v1965_v9 = vmax.f32 %v1963_v61, %v1964_v36  ;;  %v1984_v11 = vsel %vm1794_vm1, %v1519_v58, -inf  ;;  %v1991_v12 = vsel %vm1794_vm1, %v1510_v56, -inf  ;;  %v1228_v1 = vld [vmem:[#allocation3 + $0x58] sm:$0xff] }
  0x73   :  { %2406 = vmax.xlane.f32.xlu0 %v2334_v7  ;;  %v1972_v13 = vmax.f32 %v1970_v0, %v1971_v5  ;;  %v1979_v14 = vmax.f32 %v1977_v62, %v1978_v6  ;;  %v1985_v16 = vrot.slane %v1984_v11, 4  ;;  %v1992_v42 = vrot.slane %v1991_v12, 4 }
  0x74   :  { %v1966_v17 = vrot.slane %v1965_v9, 2  ;;  %v1998_v19 = vsel %vm1794_vm1, %v1520_v26, -inf  ;;  %v2005_v20 = vsel %vm1794_vm1, %v1517_v60, -inf  ;;  %v2012_v21 = vsel %vm1794_vm1, %v1521_v2, -inf }
  0x75   :  { %v1973_v43 = vrot.slane %v1972_v13, 2  ;;  %v1980_v22 = vrot.slane %v1979_v14, 2  ;;  %v1986_v23 = vmax.f32 %v1984_v11, %v1985_v16  ;;  %v1993_v24 = vmax.f32 %v1991_v12, %v1992_v42 }
  0x76   :  { %v1967_v37 = vmax.f32 %v1965_v9, %v1966_v17  ;;  %v1999_v27 = vrot.slane %v1998_v19, 4  ;;  %v2006_v28 = vrot.slane %v2005_v20, 4  ;;  %v2013_v29 = vrot.slane %v2012_v21, 4  ;;  %v1227_v9 = vld [vmem:[#allocation3 + $0x50] sm:$0xff] }
  0x77   :  { %v1974_v30 = vmax.f32 %v1972_v13, %v1973_v43  ;;  %v1981_v31 = vmax.f32 %v1979_v14, %v1980_v22  ;;  %v1987_v32 = vrot.slane %v1986_v23, 2  ;;  %v1994_v33 = vrot.slane %v1993_v24, 2 }
  0x78   :  { %v1968_v34 = vrot.slane %v1967_v37, 1  ;;  %v2000_v35 = vmax.f32 %v1998_v19, %v1999_v27  ;;  %v2007_v39 = vmax.f32 %v2005_v20, %v2006_v28  ;;  %v2014_v40 = vmax.f32 %v2012_v21, %v2013_v29 }
  0x79   :  { %v1975_v41 = vrot.slane %v1974_v30, 1  ;;  %v1982_v44 = vrot.slane %v1981_v31, 1  ;;  %v1988_v45 = vmax.f32 %v1986_v23, %v1987_v32  ;;  %v1995_v46 = vmax.f32 %v1993_v24, %v1994_v33 }
  0x7a   :  { %v1969_v53 = vmax.f32 %v1967_v37, %v1968_v34  ;;  %v2001_v47 = vrot.slane %v2000_v35, 2  ;;  %v2008_v48 = vrot.slane %v2007_v39, 2  ;;  %v2015_v49 = vrot.slane %v2014_v40, 2 }
  0x7b   :  { %v1976_v51 = vmax.f32 %v1974_v30, %v1975_v41  ;;  %v1983_v54 = vmax.f32 %v1981_v31, %v1982_v44  ;;  %v1989_v55 = vrot.slane %v1988_v45, 1  ;;  %v1996_v25 = vrot.slane %v1995_v46, 1 }
  0x7c   :  { %v2002_v52 = vmax.f32 %v2000_v35, %v2001_v47  ;;  %v2009_v56 = vmax.f32 %v2007_v39, %v2008_v48  ;;  %v2016_v57 = vmax.f32 %v2014_v40, %v2015_v49  ;;  %v1522_v58 = vcombine.high %v1225_v50, %v2791_v15 }
  0x7d   :  { %v1990_v59 = vmax.f32 %v1988_v45, %v1989_v55  ;;  %v1997_v60 = vmax.f32 %v1995_v46, %v1996_v25  ;;  %v2335_v61 = vsel %vm2307_vm2, %v1976_v51, %v1969_v53  ;;  %v1529_v62 = vrot.slane %v1225_v50, %v2853_v10 }
  0x7e   :  { %v2003_v63 = vrot.slane %v2002_v52, 1  ;;  %v2010_v26 = vrot.slane %v2009_v56, 1  ;;  %v2017_v36 = vrot.slane %v2016_v57, 1  ;;  %v2336_v0 = vsel %vm2309_vm3, %v1983_v54, %v2335_v61 }
  0x7f   :  { %v2337_v2 = vsel %vm2311_vm4, %v1990_v59, %v2336_v0  ;;  %v1536_v5 = vrot.slane %v1522_v58, %v2853_v10  ;;  %v1537_v6 = vcombine.high %v2974_v38, %v2791_v15  ;;  %v1544_v7 = vrot.slane %v2974_v38, %v2853_v10 }
  0x80   :  { %v2004_v11 = vmax.f32 %v2002_v52, %v2003_v63  ;;  %v2011_v12 = vmax.f32 %v2009_v56, %v2010_v26  ;;  %v2018_v13 = vmax.f32 %v2016_v57, %v2017_v36  ;;  %v2338_v14 = vsel %vm2313_vm5, %v1997_v60, %v2337_v2 }
  0x81   :  { %v1551_v16 = vrot.slane %v1537_v6, %v2853_v10  ;;  %v1552_v42 = vcombine.low %v1529_v62, %v1544_v7  ;;  %v1553_v17 = vcombine.high %v1529_v62, %v1544_v7  ;;  %v1253_v19 = vsel %vm1241_vm0, %v1228_v1, -inf }
  0x82   :  { %v2339_v20 = vsel %vm2315_vm6, %v2004_v11, %v2338_v14  ;;  %v1588_v21 = vcombine.high %v1227_v9, %v2791_v15  ;;  %v3036_v43 = vrot.slane %v1227_v9, %v2853_v10  ;;  %v1603_v38 = vcombine.high %v1253_v19, %v2791_v15 }
  0x83   :  { %v2340_v22 = vsel %vm2317_vm7, %v2011_v12, %v2339_v20  ;;  %v1560_v23 = vrot.slane %v1552_v42, %v2864_v18  ;;  %v1567_v24 = vrot.slane %v1553_v17, %v2864_v18  ;;  %v1568_v37 = vcombine.low %v1536_v5, %v1551_v16 }
  0x84   :  { %v2341_v27 = vsel %vm2319_vm8, %v2018_v13, %v2340_v22  ;;  %v1569_v28 = vcombine.high %v1536_v5, %v1551_v16  ;;  %v3044_v29 = vrot.slane %v1588_v21, %v2853_v10  ;;  %v3047_v30 = vrot.slane %v1253_v19, %v2853_v10 }
  0x85   :  { %2408 = vmax.xlane.f32.xlu0 %v2341_v27  ;;  %v1576_v31 = vrot.slane %v1568_v37, %v2864_v18  ;;  %v1584_v32 = vcombine.high %v1560_v23, %v2791_v15  ;;  %v1585_v33 = vcombine.high %v1567_v24, %v2791_v15  ;;  %v2019_v34 = vsel %vm1794_vm1, %v1560_v23, -inf }
  0x86   :  { %v1583_v35 = vrot.slane %v1569_v28, %v2864_v18  ;;  %v2020_v39 = vrot.slane %v2019_v34, 4  ;;  %v2033_v40 = vsel %vm1794_vm1, %v1567_v24, -inf  ;;  %v3056_v41 = vrot.slane %v1603_v38, %v2853_v10 }
  0x87   :  { %v1586_v44 = vcombine.high %v1576_v31, %v2791_v15  ;;  %v2026_v45 = vsel %vm1794_vm1, %v1584_v32, -inf  ;;  %v2034_v46 = vrot.slane %v2033_v40, 4  ;;  %v2040_v53 = vsel %vm1794_vm1, %v1585_v33, -inf }
  0x88   :  { %v1587_v47 = vcombine.high %v1583_v35, %v2791_v15  ;;  %v2021_v48 = vmax.f32 %v2019_v34, %v2020_v39  ;;  %v2027_v49 = vrot.slane %v2026_v45, 4  ;;  %v2041_v50 = vrot.slane %v2040_v53, 4 }
  0x89   :  { %v2035_v51 = vmax.f32 %v2033_v40, %v2034_v46  ;;  %v2047_v54 = vsel %vm1794_vm1, %v1576_v31, -inf  ;;  %v2054_v55 = vsel %vm1794_vm1, %v1586_v44, -inf  ;;  %v2061_v25 = vsel %vm1794_vm1, %v1583_v35, -inf }
  0x8a   :  { %v2022_v52 = vrot.slane %v2021_v48, 2  ;;  %v2028_v56 = vmax.f32 %v2026_v45, %v2027_v49  ;;  %v2042_v57 = vmax.f32 %v2040_v53, %v2041_v50  ;;  %v2048_v58 = vrot.slane %v2047_v54, 4 }
  0x8b   :  { %v2036_v59 = vrot.slane %v2035_v51, 2  ;;  %v2055_v60 = vrot.slane %v2054_v55, 4  ;;  %v2062_v61 = vrot.slane %v2061_v25, 4  ;;  %v2068_v62 = vsel %vm1794_vm1, %v1587_v47, -inf }
  0x8c   :  { %v2023_v63 = vmax.f32 %v2021_v48, %v2022_v52  ;;  %v2029_v26 = vrot.slane %v2028_v56, 2  ;;  %v2043_v36 = vrot.slane %v2042_v57, 2  ;;  %v2049_v0 = vmax.f32 %v2047_v54, %v2048_v58 }
  0x8d   :  { %v2037_v1 = vmax.f32 %v2035_v51, %v2036_v59  ;;  %v2056_v2 = vmax.f32 %v2054_v55, %v2055_v60  ;;  %v2063_v5 = vmax.f32 %v2061_v25, %v2062_v61  ;;  %v2069_v6 = vrot.slane %v2068_v62, 4 }
  0x8e   :  { %v2024_v7 = vrot.slane %v2023_v63, 1  ;;  %v2030_v9 = vmax.f32 %v2028_v56, %v2029_v26  ;;  %v2044_v11 = vmax.f32 %v2042_v57, %v2043_v36  ;;  %v2050_v12 = vrot.slane %v2049_v0, 2 }
  0x8f   :  { %v2038_v13 = vrot.slane %v2037_v1, 1  ;;  %v2057_v14 = vrot.slane %v2056_v2, 2  ;;  %v2064_v16 = vrot.slane %v2063_v5, 2  ;;  %v2070_v42 = vmax.f32 %v2068_v62, %v2069_v6 }
  0x90   :  { %v2025_v17 = vmax.f32 %v2023_v63, %v2024_v7  ;;  %v2031_v19 = vrot.slane %v2030_v9, 1  ;;  %v2045_v20 = vrot.slane %v2044_v11, 1  ;;  %v2051_v21 = vmax.f32 %v2049_v0, %v2050_v12 }
  0x91   :  { %v2039_v38 = vmax.f32 %v2037_v1, %v2038_v13  ;;  %v2058_v22 = vmax.f32 %v2056_v2, %v2057_v14  ;;  %v2065_v23 = vmax.f32 %v2063_v5, %v2064_v16  ;;  %v2071_v24 = vrot.slane %v2070_v42, 2 }
  0x92   :  { %v2032_v37 = vmax.f32 %v2030_v9, %v2031_v19  ;;  %v2046_v27 = vmax.f32 %v2044_v11, %v2045_v20  ;;  %v2052_v28 = vrot.slane %v2051_v21, 1  ;;  %v1618_v31 = vcombine.low %v3036_v43, %v3047_v30 }
  0x93   :  { %v2059_v32 = vrot.slane %v2058_v22, 1  ;;  %v2066_v33 = vrot.slane %v2065_v23, 1  ;;  %v2072_v34 = vmax.f32 %v2070_v42, %v2071_v24  ;;  %v1619_v35 = vcombine.high %v3036_v43, %v3047_v30 }
  0x94   :  { %v2053_v39 = vmax.f32 %v2051_v21, %v2052_v28  ;;  %v2342_v40 = vsel %vm2307_vm2, %v2032_v37, %v2025_v17  ;;  %v1626_v44 = vrot.slane %v1618_v31, %v2864_v18  ;;  %v1634_v45 = vcombine.low %v3044_v29, %v3056_v41 }
  0x95   :  { %v2060_v46 = vmax.f32 %v2058_v22, %v2059_v32  ;;  %v2067_v53 = vmax.f32 %v2065_v23, %v2066_v33  ;;  %v2073_v47 = vrot.slane %v2072_v34, 1  ;;  %v2343_v48 = vsel %vm2309_vm3, %v2039_v38, %v2342_v40 }
  0x96   :  { %v2344_v49 = vsel %vm2311_vm4, %v2046_v27, %v2343_v48  ;;  %v1633_v50 = vrot.slane %v1619_v35, %v2864_v18  ;;  %v1635_v43 = vcombine.high %v3044_v29, %v3056_v41  ;;  %v1642_v30 = vrot.slane %v1634_v45, %v2864_v18  ;;  %v3090_v29 = vld [vmem:[%s3213_s1 + $0x1] ss:$0 sm:$0xff]  ;;  %v1230_v45 = vld [vmem:[#allocation3 + $0x68] sm:$0xff] }
  0x97   :  { %v2074_v51 = vmax.f32 %v2072_v34, %v2073_v47  ;;  %v2345_v54 = vsel %vm2313_vm5, %v2053_v39, %v2344_v49  ;;  %v1650_v55 = vcombine.high %v1626_v44, %v2791_v15  ;;  %v2075_v25 = vsel %vm1794_vm1, %v1626_v44, -inf }
  0x98   :  { %v2346_v52 = vsel %vm2315_vm6, %v2060_v46, %v2345_v54  ;;  %v1649_v56 = vrot.slane %v1635_v43, %v2864_v18  ;;  %v1651_v57 = vcombine.high %v1633_v50, %v2791_v15  ;;  %v1652_v58 = vcombine.high %v1642_v30, %v2791_v15 }
  0x99   :  { %v2347_v41 = vsel %vm2317_vm7, %v2067_v53, %v2346_v52  ;;  %v2076_v59 = vrot.slane %v2075_v25, 4  ;;  %v2082_v60 = vsel %vm1794_vm1, %v1650_v55, -inf  ;;  %v2089_v61 = vsel %vm1794_vm1, %v1633_v50, -inf }
  0x9a   :  { %v2348_v62 = vsel %vm2319_vm8, %v2074_v51, %v2347_v41  ;;  %v1653_v63 = vcombine.high %v1649_v56, %v2791_v15  ;;  %v2083_v26 = vrot.slane %v2082_v60, 4  ;;  %v2090_v36 = vrot.slane %v2089_v61, 4 }
  0x9b   :  { %2410 = vmax.xlane.f32.xlu1 %v2348_v62  ;;  %v2077_v0 = vmax.f32 %v2075_v25, %v2076_v59  ;;  %v2096_v1 = vsel %vm1794_vm1, %v1651_v57, -inf  ;;  %v2103_v2 = vsel %vm1794_vm1, %v1642_v30, -inf  ;;  %v2110_v5 = vsel %vm1794_vm1, %v1652_v58, -inf  ;;  %2458 = vbcast.lane.b32.xlu0 %v3090_v29, 256  ;;  %v1229_v25 = vld [vmem:[#allocation3 + $0x60] sm:$0xff] }
  0x9c   :  { %v2084_v6 = vmax.f32 %v2082_v60, %v2083_v26  ;;  %v2091_v7 = vmax.f32 %v2089_v61, %v2090_v36  ;;  %v2097_v9 = vrot.slane %v2096_v1, 4  ;;  %v2104_v11 = vrot.slane %v2103_v2, 4 }
  0x9d   :  { %v2078_v12 = vrot.slane %v2077_v0, 2  ;;  %v2111_v13 = vrot.slane %v2110_v5, 4  ;;  %v2117_v14 = vsel %vm1794_vm1, %v1649_v56, -inf  ;;  %v2124_v16 = vsel %vm1794_vm1, %v1653_v63, -inf }
  0x9e   :  { %v2085_v42 = vrot.slane %v2084_v6, 2  ;;  %v2092_v17 = vrot.slane %v2091_v7, 2  ;;  %v2098_v19 = vmax.f32 %v2096_v1, %v2097_v9  ;;  %v2105_v20 = vmax.f32 %v2103_v2, %v2104_v11  ;;  %v1232_v1 = vld [vmem:[#allocation3 + $0x78] sm:$0xff]  ;;  %v1231_v9 = vld [vmem:[#allocation3 + $0x70] sm:$0xff] }
  0x9f   :  { %v2079_v21 = vmax.f32 %v2077_v0, %v2078_v12  ;;  %v2112_v38 = vmax.f32 %v2110_v5, %v2111_v13  ;;  %v2118_v22 = vrot.slane %v2117_v14, 4  ;;  %v2125_v23 = vrot.slane %v2124_v16, 4  ;;  %2466 = vbcast.lane.b32.xlu0 %v3090_v29, 272 }
  0xa0   :  { %v2086_v24 = vmax.f32 %v2084_v6, %v2085_v42  ;;  %v2093_v37 = vmax.f32 %v2091_v7, %v2092_v17  ;;  %v2099_v27 = vrot.slane %v2098_v19, 2  ;;  %v2106_v28 = vrot.slane %v2105_v20, 2 }
  0xa1   :  { %v2080_v31 = vrot.slane %v2079_v21, 1  ;;  %v2113_v32 = vrot.slane %v2112_v38, 2  ;;  %v2119_v33 = vmax.f32 %v2117_v14, %v2118_v22  ;;  %v2126_v34 = vmax.f32 %v2124_v16, %v2125_v23 }
  0xa2   :  { %v2087_v35 = vrot.slane %v2086_v24, 1  ;;  %v2094_v39 = vrot.slane %v2093_v37, 1  ;;  %v2100_v40 = vmax.f32 %v2098_v19, %v2099_v27  ;;  %v2107_v44 = vmax.f32 %v2105_v20, %v2106_v28 }
  0xa3   :  { %v2081_v46 = vmax.f32 %v2079_v21, %v2080_v31  ;;  %v2114_v53 = vmax.f32 %v2112_v38, %v2113_v32  ;;  %v2120_v47 = vrot.slane %v2119_v33, 2  ;;  %v2127_v48 = vrot.slane %v2126_v34, 2 }
  0xa4   :  { %v2088_v49 = vmax.f32 %v2086_v24, %v2087_v35  ;;  %v2095_v50 = vmax.f32 %v2093_v37, %v2094_v39  ;;  %v2101_v43 = vrot.slane %v2100_v40, 1  ;;  %v2108_v30 = vrot.slane %v2107_v44, 1 }
  0xa5   :  { %v2115_v51 = vrot.slane %v2114_v53, 1  ;;  %v2121_v54 = vmax.f32 %v2119_v33, %v2120_v47  ;;  %v2128_v55 = vmax.f32 %v2126_v34, %v2127_v48  ;;  %v1255_v52 = vsel %vm1241_vm0, %v1230_v45, -inf }
  0xa6   :  { %v2102_v56 = vmax.f32 %v2100_v40, %v2101_v43  ;;  %v2109_v57 = vmax.f32 %v2107_v44, %v2108_v30  ;;  %v2349_v58 = vsel %vm2307_vm2, %v2088_v49, %v2081_v46  ;;  %v1654_v41 = vcombine.high %v1229_v25, %v2791_v15 }
  0xa7   :  { %v2116_v59 = vmax.f32 %v2114_v53, %v2115_v51  ;;  %v2122_v60 = vrot.slane %v2121_v54, 1  ;;  %v2129_v61 = vrot.slane %v2128_v55, 1  ;;  %v2350_v62 = vsel %vm2309_vm3, %v2095_v50, %v2349_v58 }
  0xa8   :  { %v2351_v63 = vsel %vm2311_vm4, %v2102_v56, %v2350_v62  ;;  %v1661_v26 = vrot.slane %v1229_v25, %v2853_v10  ;;  %v1668_v36 = vrot.slane %v1654_v41, %v2853_v10  ;;  %v1669_v0 = vcombine.high %v1255_v52, %v2791_v15 }
  0xa9   :  { %v2123_v2 = vmax.f32 %v2121_v54, %v2122_v60  ;;  %v2130_v5 = vmax.f32 %v2128_v55, %v2129_v61  ;;  %v2352_v6 = vsel %vm2313_vm5, %v2109_v57, %v2351_v63  ;;  %v1676_v7 = vrot.slane %v1255_v52, %v2853_v10 }
  0xaa   :  { %v2353_v11 = vsel %vm2315_vm6, %v2116_v59, %v2352_v6  ;;  %v1683_v12 = vrot.slane %v1669_v0, %v2853_v10  ;;  %v1720_v13 = vcombine.high %v1231_v9, %v2791_v15  ;;  %v1257_v17 = vsel %vm1241_vm0, %v1232_v1, -inf }
  0xab   :  { %v2354_v14 = vsel %vm2317_vm7, %v2123_v2, %v2353_v11  ;;  %v1684_v16 = vcombine.low %v1661_v26, %v1676_v7  ;;  %v1685_v42 = vcombine.high %v1661_v26, %v1676_v7  ;;  %v3125_v23 = vrot.slane %v1231_v9, %v2853_v10 }
  0xac   :  { %v2355_v19 = vsel %vm2319_vm8, %v2130_v5, %v2354_v14  ;;  %v1700_v20 = vcombine.low %v1668_v36, %v1683_v12  ;;  %v1701_v21 = vcombine.high %v1668_v36, %v1683_v12  ;;  %v3128_v24 = vrot.slane %v1720_v13, %v2853_v10 }
  0xad   :  { %2412 = vmax.xlane.f32.xlu1 %v2355_v19  ;;  %v1692_v38 = vrot.slane %v1684_v16, %v2864_v18  ;;  %v1699_v22 = vrot.slane %v1685_v42, %v2864_v18  ;;  %v1735_v27 = vcombine.high %v1257_v17, %v2791_v15  ;;  %v3134_v28 = vrot.slane %v1257_v17, %v2853_v10 }
  0xae   :  { %v1708_v37 = vrot.slane %v1700_v20, %v2864_v18  ;;  %v1715_v8 = vrot.slane %v1701_v21, %v2864_v18 }
  0xaf   :  { %v1716_v31 = vcombine.high %v1692_v38, %v2791_v15  ;;  %v1717_v32 = vcombine.high %v1699_v22, %v2791_v15  ;;  %v2131_v33 = vsel %vm1794_vm1, %v1692_v38, -inf  ;;  %v2145_v34 = vsel %vm1794_vm1, %v1699_v22, -inf }
  0xb0   :  { %v1718_v35 = vcombine.high %v1708_v37, %v2791_v15  ;;  %v1719_v39 = vcombine.high %v1715_v8, %v2791_v15  ;;  %v2132_v40 = vrot.slane %v2131_v33, 4  ;;  %v2146_v44 = vrot.slane %v2145_v34, 4 }
  0xb1   :  { %v2138_v45 = vsel %vm1794_vm1, %v1716_v31, -inf  ;;  %v2152_v46 = vsel %vm1794_vm1, %v1717_v32, -inf  ;;  %v2159_v53 = vsel %vm1794_vm1, %v1708_v37, -inf  ;;  %v2173_v47 = vsel %vm1794_vm1, %v1715_v8, -inf }
  0xb2   :  { %v2133_v48 = vmax.f32 %v2131_v33, %v2132_v40  ;;  %v2139_v49 = vrot.slane %v2138_v45, 4  ;;  %v2147_v50 = vmax.f32 %v2145_v34, %v2146_v44  ;;  %v2153_v43 = vrot.slane %v2152_v46, 4 }
  0xb3   :  { %v2160_v30 = vrot.slane %v2159_v53, 4  ;;  %v2166_v51 = vsel %vm1794_vm1, %v1718_v35, -inf  ;;  %v2174_v54 = vrot.slane %v2173_v47, 4  ;;  %v2180_v55 = vsel %vm1794_vm1, %v1719_v39, -inf }
  0xb4   :  { %v2134_v25 = vrot.slane %v2133_v48, 2  ;;  %v2140_v52 = vmax.f32 %v2138_v45, %v2139_v49  ;;  %v2148_v56 = vrot.slane %v2147_v50, 2  ;;  %v2154_v57 = vmax.f32 %v2152_v46, %v2153_v43 }
  0xb5   :  { %v2161_v58 = vmax.f32 %v2159_v53, %v2160_v30  ;;  %v2167_v41 = vrot.slane %v2166_v51, 4  ;;  %v2175_v59 = vmax.f32 %v2173_v47, %v2174_v54  ;;  %v2181_v60 = vrot.slane %v2180_v55, 4 }
  0xb6   :  { %v2135_v61 = vmax.f32 %v2133_v48, %v2134_v25  ;;  %v2141_v62 = vrot.slane %v2140_v52, 2  ;;  %v2149_v63 = vmax.f32 %v2147_v50, %v2148_v56  ;;  %v2155_v26 = vrot.slane %v2154_v57, 2 }
  0xb7   :  { %v2162_v36 = vrot.slane %v2161_v58, 2  ;;  %v2168_v0 = vmax.f32 %v2166_v51, %v2167_v41  ;;  %v2176_v1 = vrot.slane %v2175_v59, 2  ;;  %v2182_v2 = vmax.f32 %v2180_v55, %v2181_v60 }
  0xb8   :  { %v2136_v5 = vrot.slane %v2135_v61, 1  ;;  %v2142_v6 = vmax.f32 %v2140_v52, %v2141_v62  ;;  %v2150_v7 = vrot.slane %v2149_v63, 1  ;;  %v2156_v9 = vmax.f32 %v2154_v57, %v2155_v26 }
  0xb9   :  { %v2163_v11 = vmax.f32 %v2161_v58, %v2162_v36  ;;  %v2169_v12 = vrot.slane %v2168_v0, 2  ;;  %v2177_v13 = vmax.f32 %v2175_v59, %v2176_v1  ;;  %v2183_v14 = vrot.slane %v2182_v2, 2 }
  0xba   :  { %v2137_v16 = vmax.f32 %v2135_v61, %v2136_v5  ;;  %v2143_v42 = vrot.slane %v2142_v6, 1  ;;  %v2151_v17 = vmax.f32 %v2149_v63, %v2150_v7  ;;  %v2157_v19 = vrot.slane %v2156_v9, 1 }
  0xbb   :  { %v2164_v20 = vrot.slane %v2163_v11, 1  ;;  %v2170_v21 = vmax.f32 %v2168_v0, %v2169_v12  ;;  %v2178_v38 = vrot.slane %v2177_v13, 1  ;;  %v2184_v22 = vmax.f32 %v2182_v2, %v2183_v14 }
  0xbc   :  { %v2144_v37 = vmax.f32 %v2142_v6, %v2143_v42  ;;  %v2158_v8 = vmax.f32 %v2156_v9, %v2157_v19  ;;  %v1749_v31 = vrot.slane %v1735_v27, %v2853_v10  ;;  %v1750_v32 = vcombine.low %v3125_v23, %v3134_v28 }
  0xbd   :  { %v2165_v33 = vmax.f32 %v2163_v11, %v2164_v20  ;;  %v2171_v34 = vrot.slane %v2170_v21, 1  ;;  %v2179_v35 = vmax.f32 %v2177_v13, %v2178_v38  ;;  %v2185_v39 = vrot.slane %v2184_v22, 1 }
  0xbe   :  { %v2356_v40 = vsel %vm2307_vm2, %v2144_v37, %v2137_v16  ;;  %v1751_v44 = vcombine.high %v3125_v23, %v3134_v28  ;;  %v1758_v45 = vrot.slane %v1750_v32, %v2864_v18  ;;  %v1766_v46 = vcombine.low %v3128_v24, %v1749_v31 }
  0xbf   :  { %v2172_v53 = vmax.f32 %v2170_v21, %v2171_v34  ;;  %v2186_v47 = vmax.f32 %v2184_v22, %v2185_v39  ;;  %v2357_v10 = vsel %vm2309_vm3, %v2151_v17, %v2356_v40  ;;  %v1767_v27 = vcombine.high %v3128_v24, %v1749_v31 }
  0xc0   :  { %v2358_v48 = vsel %vm2311_vm4, %v2158_v8, %v2357_v10  ;;  %v1765_v49 = vrot.slane %v1751_v44, %v2864_v18  ;;  %v1774_v50 = vrot.slane %v1766_v46, %v2864_v18  ;;  %v1782_v43 = vcombine.high %v1758_v45, %v2791_v15 }
  0xc1   :  { %v2359_v23 = vsel %vm2313_vm5, %v2165_v33, %v2358_v48  ;;  %v1781_v28 = vrot.slane %v1767_v27, %v2864_v18  ;;  %v2187_v30 = vsel %vm1794_vm1, %v1758_v45, -inf  ;;  %v2792_v25 = vmov 0  }
  0xc2   :  { %v2360_v51 = vsel %vm2315_vm6, %v2172_v53, %v2359_v23  ;;  %v1783_v54 = vcombine.high %v1765_v49, %v2791_v15  ;;  %v1784_v24 = vcombine.high %v1774_v50, %v2791_v15  ;;  %v2188_v55 = vrot.slane %v2187_v30, 4  ;;  %2709 = vset.pattern.permute.xlu0 %v2792_v25  ;;  %2710 = vset.pattern.permute.xlu1 %v2792_v25 }
  0xc3   :  { %v2361_v52 = vsel %vm2317_vm7, %v2179_v35, %v2360_v51  ;;  %v1785_v56 = vcombine.high %v1781_v28, %v2791_v15  ;;  %v2194_v57 = vsel %vm1794_vm1, %v1782_v43, -inf  ;;  %v2201_v18 = vsel %vm1794_vm1, %v1765_v49, -inf }
  0xc4   :  { %v2362_v58 = vsel %vm2319_vm8, %v2186_v47, %v2361_v52  ;;  %v2189_v41 = vmax.f32 %v2187_v30, %v2188_v55  ;;  %v2195_v59 = vrot.slane %v2194_v57, 4  ;;  %v2202_v60 = vrot.slane %v2201_v18, 4 }
  0xc5   :  { %2414 = vmax.xlane.f32.xlu1 %v2362_v58  ;;  %v2208_v61 = vsel %vm1794_vm1, %v1783_v54, -inf  ;;  %v2215_v62 = vsel %vm1794_vm1, %v1774_v50, -inf  ;;  %v2222_v63 = vsel %vm1794_vm1, %v1784_v24, -inf  ;;  %v2229_v26 = vsel %vm1794_vm1, %v1781_v28, -inf  ;;  %v2426_v58 = vpop.permute.xlu0 %2425 }
  0xc6   :  { %v2190_v36 = vrot.slane %v2189_v41, 2  ;;  %v2196_v0 = vmax.f32 %v2194_v57, %v2195_v59  ;;  %v2203_v1 = vmax.f32 %v2201_v18, %v2202_v60  ;;  %v2209_v2 = vrot.slane %v2208_v61, 4 }
  0xc7   :  { %v2216_v5 = vrot.slane %v2215_v62, 4  ;;  %v2223_v6 = vrot.slane %v2222_v63, 4  ;;  %v2230_v7 = vrot.slane %v2229_v26, 4  ;;  %v2236_v9 = vsel %vm1794_vm1, %v1785_v56, -inf }
  0xc8   :  { %v2191_v11 = vmax.f32 %v2189_v41, %v2190_v36  ;;  %v2197_v12 = vrot.slane %v2196_v0, 2  ;;  %v2204_v13 = vrot.slane %v2203_v1, 2  ;;  %v2210_v14 = vmax.f32 %v2208_v61, %v2209_v2 }
  0xc9   :  { %v2217_v16 = vmax.f32 %v2215_v62, %v2216_v5  ;;  %v2224_v42 = vmax.f32 %v2222_v63, %v2223_v6  ;;  %v2231_v17 = vmax.f32 %v2229_v26, %v2230_v7  ;;  %v2237_v19 = vrot.slane %v2236_v9, 4 }
  0xca   :  { %v2192_v20 = vrot.slane %v2191_v11, 1  ;;  %v2198_v21 = vmax.f32 %v2196_v0, %v2197_v12  ;;  %v2205_v38 = vmax.f32 %v2203_v1, %v2204_v13  ;;  %v2211_v22 = vrot.slane %v2210_v14, 2  ;;  %v2430_v0 = vpop.permute.xlu1 %2429 }
  0xcb   :  { %v2218_v37 = vrot.slane %v2217_v16, 2  ;;  %v2225_v8 = vrot.slane %v2224_v42, 2  ;;  %v2232_v31 = vrot.slane %v2231_v17, 2  ;;  %v2238_v32 = vmax.f32 %v2236_v9, %v2237_v19 }
  0xcc   :  { %v2193_v33 = vmax.f32 %v2191_v11, %v2192_v20  ;;  %v2199_v34 = vrot.slane %v2198_v21, 1  ;;  %v2206_v35 = vrot.slane %v2205_v38, 1  ;;  %v2212_v39 = vmax.f32 %v2210_v14, %v2211_v22 }
  0xcd   :  { %v2219_v40 = vmax.f32 %v2217_v16, %v2218_v37  ;;  %v2226_v44 = vmax.f32 %v2224_v42, %v2225_v8  ;;  %v2233_v45 = vmax.f32 %v2231_v17, %v2232_v31  ;;  %v2239_v46 = vrot.slane %v2238_v32, 2 }
  0xce   :  { %v2200_v53 = vmax.f32 %v2198_v21, %v2199_v34  ;;  %v2207_v47 = vmax.f32 %v2205_v38, %v2206_v35  ;;  %v2213_v10 = vrot.slane %v2212_v39, 1  ;;  %v2434_v1 = vpop.permute.xlu1 %2433 }
  0xcf   :  { %v2220_v27 = vrot.slane %v2219_v40, 1  ;;  %v2227_v48 = vrot.slane %v2226_v44, 1  ;;  %v2234_v49 = vrot.slane %v2233_v45, 1  ;;  %v2240_v50 = vmax.f32 %v2238_v32, %v2239_v46  ;;  %v2493_v46 = vld [vmem:[#allocation6 + $0x8] sm:$0xff] }
  0xd0   :  { %v2214_v43 = vmax.f32 %v2212_v39, %v2213_v10  ;;  %v2363_v23 = vsel %vm2307_vm2, %v2200_v53, %v2193_v33 }
  0xd1   :  { %v2221_v28 = vmax.f32 %v2219_v40, %v2220_v27  ;;  %v2228_v30 = vmax.f32 %v2226_v44, %v2227_v48  ;;  %v2241_v51 = vrot.slane %v2240_v50, 1  ;;  %v2235_v54 = vmax.f32 %v2233_v45, %v2234_v49  ;;  %v2492_v45 = vld [vmem:[#allocation6] sm:$0xff]  ;;  %v2494_v27 = vld [vmem:[#allocation6 + $0x10] sm:$0xff]  ;;  %v2495_v48 = vld [vmem:[#allocation6 + $0x18] sm:$0xff] }
  0xd2   :  { %v2364_v24 = vsel %vm2309_vm3, %v2207_v47, %v2363_v23  ;;  %v2438_v2 = vpop.permute.xlu1 %2437  ;;  %v2691_v53 = vpack.c.bf16 %v2493_v46, %v2492_v45  ;;  %v2793_v47 = vmov 0.0|0.0   ;;  %v2694_v49 = vpack.c.bf16 %v2495_v48, %v2494_v27 }
  0xd3   :  { %v2242_v55 = vmax.f32 %v2240_v50, %v2241_v51  ;;  %v2365_v25 = vsel %vm2311_vm4, %v2214_v43, %v2364_v24  ;;  %2690 = vmatprep.subr.bf16.mxu0 %v2793_v47  ;;  %v2553_v51 = vadd.s32 4294967272, %v2845_v3 }
  0xd4   :  { %v2366_v52 = vsel %vm2313_vm5, %v2221_v28, %v2365_v25  ;;  %2692 = vmatpush3.bf16.msra.mxu0 %v2691_v53  ;;  %v2539_v28 = vadd.s32 4294967288, %v2845_v3 }
  0xd5   :  { %v2367_v56 = vsel %vm2315_vm6, %v2228_v30, %v2366_v52  ;;  %2693 = vmatprep.subr.bf16.mxu0 %v2793_v47  ;;  %v2546_v30 = vadd.s32 4294967280, %v2845_v3  ;;  %v2556_v15 = vsub.s32 %v2553_v51, %v2847_v4 }
  0xd6   :  { %v2368_v57 = vsel %vm2317_vm7, %v2235_v54, %v2367_v56  ;;  %v2542_v25 = vsub.s32 %v2539_v28, %v2847_v4 }
  0xd7   :  { %v2369_v18 = vsel %vm2319_vm8, %v2242_v55, %v2368_v57  ;;  %v2537_v55 = vsub.s32 %v2845_v3, %v2847_v4  ;;  %v2549_v52 = vsub.s32 %v2546_v30, %v2847_v4 }
  0xd8   :  { %2416 = vmax.xlane.f32.xlu1 %v2369_v18  ;;  %v2403_v41 = vpop.xlane.xlu0 %2402  ;;  %2695 = vmatpush3.bf16.msra.mxu0 %v2694_v49 }
  0xd9   :  { %v2443_v62 = vmul.f32 %v2426_v58, %v2403_v41 }
  0xe9   :  { %2462 = vbcast.lane.b32.xlu1 %v3090_v29, 264  ;;  %v2405_v59 = vpop.xlane.xlu0 %2404 }
  0xea   :  { %v2444_v11 = vmul.f32 %v2430_v0, %v2405_v59 }
  0xed   :  { %2470 = vbcast.lane.b32.xlu1 %v3090_v29, 280 }
 0x100   :  { %v2407_v60 = vpop.xlane.xlu0 %2406 }
 0x101   :  { %v2445_v37 = vmul.f32 %v2434_v1, %v2407_v60 }
 0x112   :  { %v2409_v61 = vpop.xlane.xlu0 %2408 }
 0x113   :  { %v2446_v35 = vmul.f32 %v2438_v2, %v2409_v61 }
 0x116   :  { %v2459_v63 = vpop.permute.xlu0 %2458 }
 0x117   :  { %v2476_v26 = vadd.f32 %v2459_v63, %v2443_v62 }
 0x119   :  { %v2484_v36 = vmax.f32 %v2476_v26, 0.0 }
 0x11a   :  { %v2467_v17 = vpop.permute.xlu0 %2466 }
 0x11b   :  { %2512 = vperm.xlu0 %2709, %v2484_v36   ;;  %v2478_v32 = vadd.f32 %v2467_v17, %v2445_v37 }
 0x11d   :  { %v2486_v39 = vmax.f32 %v2478_v32, 0.0 }
 0x128   :  { %v2411_v5 = vpop.xlane.xlu1 %2410 }
 0x129   :  { %v2447_v12 = vmul.f32 %v2426_v58, %v2411_v5 }
 0x12b   :  { %v2480_v19 = vadd.f32 %v2459_v63, %v2447_v12 }
 0x12d   :  { %v2488_v31 = vmax.f32 %v2480_v19, 0.0 }
 0x13a   :  { %v2413_v6 = vpop.xlane.xlu1 %2412 }
 0x13b   :  { %v2448_v29 = vmul.f32 %v2430_v0, %v2413_v6  ;;  %v2672_v6 = vld [vmem:[%s3215_s3] ss:$0 sm:$0xff] }
 0x152   :  { %v2415_v7 = vpop.xlane.xlu1 %2414 }
 0x153   :  { %v2449_v13 = vmul.f32 %v2434_v1, %v2415_v7 }
 0x155   :  { %v2482_v20 = vadd.f32 %v2467_v17, %v2449_v13 }
 0x157   :  { %v2490_v33 = vmax.f32 %v2482_v20, 0.0 }
 0x165   :  { %v2417_v9 = vpop.xlane.xlu1 %2416 }
 0x166   :  { %v2450_v8 = vmul.f32 %v2438_v2, %v2417_v9 }
 0x169   :  { %v2463_v14 = vpop.permute.xlu1 %2462 }
 0x16a   :  { %v2477_v16 = vadd.f32 %v2463_v14, %v2444_v11  ;;  %v2481_v42 = vadd.f32 %v2463_v14, %v2448_v29 }
 0x16c   :  { %v2485_v21 = vmax.f32 %v2477_v16, 0.0  ;;  %v2489_v38 = vmax.f32 %v2481_v42, 0.0 }
 0x16d   :  { %v2471_v22 = vpop.permute.xlu1 %2470 }
 0x16e   :  { %2515 = vperm.xlu1 %2710, %v2485_v21   ;;  %2527 = vperm.xlu0 %2709, %v2489_v38   ;;  %v2483_v34 = vadd.f32 %v2471_v22, %v2450_v8  ;;  %v2479_v40 = vadd.f32 %v2471_v22, %v2446_v35 }
 0x170   :  { %v2491_v44 = vmax.f32 %v2483_v34, 0.0  ;;  %v2487_v10 = vmax.f32 %v2479_v40, 0.0 }
 0x172   :  { %2524 = vperm.xlu1 %2710, %v2488_v31   ;;  %2530 = vperm.xlu0 %2709, %v2490_v33  }
 0x176   :  { %2533 = vperm.xlu0 %2709, %v2491_v44   ;;  %2518 = vperm.xlu1 %2710, %v2486_v39  }
 0x17a   :  { %2521 = vperm.xlu1 %2710, %v2487_v10  }
 0x19a   :  { %v2513_v50 = vpop.permute.xlu0 %2512 }
 0x19b   :  { %v2538_v61 = vrot.slane %v2513_v50, %v2537_v55 }
 0x1ed   :  { %v2516_v43 = vpop.permute.xlu1 %2515  ;;  %v2528_v23 = vpop.permute.xlu0 %2527 }
 0x1ee   :  { %v2543_v58 = vrot.slane %v2516_v43, %v2542_v25  ;;  %v2567_v41 = vrot.slane %v2528_v23, %v2542_v25 }
 0x1f0   :  { %v2545_v26 = vsel %vm2544_vm10, %v2543_v58, %v2538_v61 }
 0x1f1   :  { %v2525_v54 = vpop.permute.xlu1 %2524  ;;  %v2531_v24 = vpop.permute.xlu0 %2530 }
 0x1f2   :  { %v2563_v56 = vrot.slane %v2525_v54, %v2537_v55  ;;  %v2572_v59 = vrot.slane %v2531_v24, %v2549_v52 }
 0x1f4   :  { %v2568_v62 = vsel %vm2544_vm10, %v2567_v41, %v2563_v56 }
 0x1f5   :  { %v2519_v57 = vpop.permute.xlu1 %2518  ;;  %v2534_v18 = vpop.permute.xlu0 %2533  ;;  %v2573_v0 = vsel %vm2551_vm11, %v2572_v59, %v2568_v62 }
 0x1f6   :  { %v2550_v60 = vrot.slane %v2519_v57, %v2549_v52  ;;  %v2577_v63 = vrot.slane %v2534_v18, %v2556_v15 }
 0x1f8   :  { %v2552_v1 = vsel %vm2551_vm11, %v2550_v60, %v2545_v26  ;;  %v2578_v2 = vsel %vm2558_vm12, %v2577_v63, %v2573_v0 }
 0x1f9   :  { %v2522_v3 = vpop.permute.xlu1 %2521 }
 0x1fa   :  { %v2557_v36 = vrot.slane %v2522_v3, %v2556_v15 }
 0x1fc   :  { %v2559_v4 = vsel %vm2558_vm12, %v2557_v36, %v2552_v1 }
 0x1fd   :  { %v2579_v5 = vsel %vm2307_vm2, %v2578_v2, %v2559_v4 }
 0x1fe   :  { %2688 = vmatmul.mubr.msk.f32.vlgmr.msra.gmra.mrb[0].mxu0 %vm2580_vm13, %v2579_v5 }
 0x2d1   :  { %v2649_v7 = vpop.f32.mrb[0].mxu0 }
 0x2d2   :  { %v2650_v9 = vadd.f32 %v2672_v6, %v2649_v7  ;;  %v2689_v11 = vpop.f32.mrb[1].mxu0 }
 0x2d4   :  { %2653 = vst [vmem:[#allocation8] sm:$0x3] %v2650_v9 }
 0x2d5   :  { %2766 = shalt.err (!%p2763_p6)
}
 0x2d6   :  { %s2767_s25 = scalar_lea.hbm %s3216_s4, 32 }
 0x2d7   :  { %p2768_p7 = scmp.ne.s32.totalorder %s3216_s4, %s2767_s25  ;;  %p2771_p8 = scmp.lt.u32.totalorder %s2767_s25, %s3216_s4 }
 0x2d9   :  { %p2773_p9 = pnand %p2771_p8, %p2768_p7 }
 0x2db   :  { %2776 = shalt.err (!%p2773_p9)
}
 0x2dc   :  { %2663 = dma.vmem_to_hbm [thread:$0]  %s2661_s21, 32, %s3216_s4, [#allocation5]  }
 0x2dd   :  { %2781 = dma.done.wait [#allocation5], 32  }
 0x2de   :  { %2782 = vsyncadd [#allocation5], 4294967264 }
 0x2df   :  { %2667 = vsyncpa [#allocation4], 1 }
 0x2e0   :  { %2668 = vsyncpa [#allocation7], 1 }
 0x2e1   :  { %2669 = vsyncpa [#allocation5], 1 }

</bundles_post_ra>
